<compile_context>
chip_gen: v5e
topology: v5e:2x2
jax: 0.10.0
libtpu: 0.0.40
codegen_flags: <defaults>
</compile_context>

<pallas_src>
import jax
import jax.numpy as jnp
from jax.experimental import pallas as pl
from jax.experimental.pallas import tpu as pltpu


# ----------------------------- kernels --------------------------------------


def ffn_kernel_f32out(x_ref, w1_ref, b1_ref, w2_ref, b2_ref, o_ref):
    """out = relu(x@W1+b1) @ W2 + b2, accumulating directly into the f32 output."""
    j = pl.program_id(1)

    @pl.when(j == 0)
    def _():
        # Initialize the resident output block with b2 (saves a final add pass).
        o_ref[...] = jnp.broadcast_to(b2_ref[...], o_ref.shape)

    # Linear1 slice: (tm, Dp) @ (Dp, tf) on the MXU (bf16 in, f32 acc).
    h = jnp.dot(x_ref[...], w1_ref[...], preferred_element_type=jnp.float32)
    h = jnp.maximum(h + b1_ref[...], 0.0)          # bias + ReLU (VPU, f32)

    # Dropout: inference/eval mode => identity.
    # TODO(synk): training-mode dropout would use pltpu.prng_seed / prng_random_bits.

    # Linear2 partial product over this dff tile, accumulated in f32.
    o_ref[...] += jnp.dot(h.astype(jnp.bfloat16), w2_ref[...],
                          preferred_element_type=jnp.float32)


def ffn_kernel_scratch(x_ref, w1_ref, b1_ref, w2_ref, b2_ref, o_ref, acc_ref):
    """Same math, f32 scratch accumulator for non-f32 output dtypes."""
    j = pl.program_id(1)

    @pl.when(j == 0)
    def _():
        acc_ref[...] = jnp.zeros_like(acc_ref)

    h = jnp.dot(x_ref[...], w1_ref[...], preferred_element_type=jnp.float32)
    h = jnp.maximum(h + b1_ref[...], 0.0)

    acc_ref[...] += jnp.dot(h.astype(jnp.bfloat16), w2_ref[...],
                            preferred_element_type=jnp.float32)

    @pl.when(j == pl.num_programs(1) - 1)
    def _():
        o_ref[...] = (acc_ref[...] + b2_ref[...]).astype(o_ref.dtype)


# ----------------------------- wrapper ---------------------------------------


def _round_up(x, m):
    return ((x + m - 1) // m) * m


def _vmem_capacity_bytes():
    """Physical VMEM per TensorCore; conservative fallback if query fails."""
    try:
        info = pltpu.get_tpu_info()
        cap = getattr(info, "vmem_capacity_bytes", None)
        if cap:
            return int(cap)
    except Exception:
        pass
    return 64 * 1024 * 1024  # v7x per-TC VMEM (most restrictive generation)


def _choose_tiles(rows, d_pad, dff_pad, out_itemsize, vmem_cap):
    """Pick (tm, tf) so the double-buffered working set fits in ~70% of VMEM."""
    # Hidden tile: lane-aligned, <= 512 (<=256 for very wide d_model).
    tf_target = 512 if d_pad <= 4096 else 256
    tf = min(tf_target, dff_pad)

    budget = int(vmem_cap * 0.70)
    tm_row_cap = _round_up(rows, 16)          # bf16 x => keep tm a multiple of 16
    chosen = 16
    for cand in (1024, 768, 512, 384, 256, 128, 64, 32, 16):
        tm = min(cand, tm_row_cap)
        footprint = (
            2 * d_pad * tf * 2        # W1 double buffer (bf16)
            + 2 * tf * d_pad * 2      # W2 double buffer (bf16)
            + 2 * tm * d_pad * 2      # x double buffer (bf16)
            + 2 * tm * d_pad * out_itemsize   # out double buffer
            + tm * d_pad * 4          # worst-case f32 accumulator scratch
            + 4 * tf * 4 + 4 * d_pad * 4      # bias buffers
        )
        if footprint <= budget:
            chosen = tm
            break
    return chosen, tf


def feed_forward(x, w1, b1, w2, b2, *, tm=None):
    """x: [B, S, D] -> [B, S, D] computing linear2(relu(linear1(x))) (dropout=eval).

    w1: [D, dff], b1: [dff], w2: [dff, D], b2: [D]  (x @ W + b convention).
    """
    B, S, D = x.shape
    dff = w1.shape[1]
    rows = B * S
    out_dtype = x.dtype
    out_itemsize = jnp.dtype(out_dtype).itemsize

    # --- padded geometry -----------------------------------------------------
    d_pad = _round_up(D, 128)                 # lane-dense output (no vst.msk)
    vmem_cap = _vmem_capacity_bytes()

    if tm is None:
        # tf is provisional until dff_pad is known; dff_pad >= 128 always.
        tm, tf = _choose_tiles(rows, d_pad, _round_up(dff, 128),
                               out_itemsize, vmem_cap)
        # Megacore (v7x): prefer >= 2 row tiles so the parallel axis shards
        # across both TensorCores.
        if pl.cdiv(rows, tm) < 2 and rows > 16:
            tm = max(16, _round_up((rows + 1) // 2, 16))
    else:
        tf = min(512, _round_up(dff, 128))

    dff_pad = _round_up(dff, tf)              # zero-padded hidden columns are exact
    rows_pad = _round_up(rows, tm)

    # --- padded / pre-cast operands ------------------------------------------
    x2 = x.reshape(rows, D)
    x2 = jnp.pad(x2, ((0, rows_pad - rows), (0, d_pad - D))).astype(jnp.bfloat16)

    w1p = jnp.pad(w1, ((0, d_pad - D), (0, dff_pad - dff))).astype(jnp.bfloat16)
    w2p = jnp.pad(w2, ((0, dff_pad - dff), (0, d_pad - D))).astype(jnp.bfloat16)
    b1p = jnp.pad(b1, (0, dff_pad - dff)).reshape(1, dff_pad).astype(jnp.float32)
    b2p = jnp.pad(b2, (0, d_pad - D)).reshape(1, d_pad).astype(jnp.float32)

    grid = (rows_pad // tm, dff_pad // tf)
    n_row_tiles = grid[0]

    # Weights are re-streamed from HBM once per row tile.
    cost = pl.CostEstimate(
        flops=4 * rows_pad * d_pad * dff_pad,
        transcendentals=0,
        bytes_accessed=int(
            x2.size * 2
            + n_row_tiles * (w1p.size * 2 + w2p.size * 2 + b1p.size * 4 + b2p.size * 4)
            + rows_pad * d_pad * out_itemsize
        ),
    )

    in_specs = [
        pl.BlockSpec((tm, d_pad), lambda i, j: (i, 0)),    # x row tile (bf16)
        pl.BlockSpec((d_pad, tf), lambda i, j: (0, j)),    # W1 dff-tile
        pl.BlockSpec((1, tf),     lambda i, j: (0, j)),    # b1 dff-tile
        pl.BlockSpec((tf, d_pad), lambda i, j: (j, 0)),    # W2 dff-tile
        pl.BlockSpec((1, d_pad),  lambda i, j: (0, 0)),    # b2
    ]
    out_spec = pl.BlockSpec((tm, d_pad), lambda i, j: (i, 0))

    compiler_params = pltpu.CompilerParams(
        dimension_semantics=("parallel", "arbitrary"),
        vmem_limit_bytes=int(vmem_cap * 0.75),
    )

    if out_dtype == jnp.float32:
        kernel, scratch = ffn_kernel_f32out, []           # accumulate in o_ref
    else:
        kernel, scratch = ffn_kernel_scratch, [pltpu.VMEM((tm, d_pad), jnp.float32)]

    out = pl.pallas_call(
        kernel,
        out_shape=jax.ShapeDtypeStruct((rows_pad, d_pad), out_dtype),
        grid_spec=pltpu.PrefetchScalarGridSpec(
            num_scalar_prefetch=0,
            grid=grid,
            in_specs=in_specs,
            out_specs=out_spec,
            scratch_shapes=scratch,
        ),
        compiler_params=compiler_params,
        cost_estimate=cost,
    )(x2, w1p, b1p, w2p, b2p)

    return out[:rows, :D].reshape(B, S, D)


# ----------------------------- reference & demo ------------------------------


def reference(x, w1, b1, w2, b2):
    xf = x.astype(jnp.float32)
    h = jnp.maximum(xf @ w1 + b1, 0.0)
    return (h @ w2 + b2).astype(x.dtype)


if __name__ == "__main__":
    B, S, D_MODEL, DFF = 2, 8, 32, 64
    key = jax.random.PRNGKey(0)
    kx, kw1, kb1, kw2, kb2 = jax.random.split(key, 5)

    x = jax.random.normal(kx, (B, S, D_MODEL), dtype=jnp.float32)
    # Deterministic Linear parameters (stored as [in, out]; matches x @ W + b).
    w1 = jax.random.normal(kw1, (D_MODEL, DFF), dtype=jnp.float32) * 0.05
    b1 = jax.random.normal(kb1, (DFF,), dtype=jnp.float32) * 0.01
    w2 = jax.random.normal(kw2, (DFF, D_MODEL), dtype=jnp.float32) * 0.05
    b2 = jax.random.normal(kb2, (D_MODEL,), dtype=jnp.float32) * 0.01

    out = feed_forward(x, w1, b1, w2, b2)
    out = jax.block_until_ready(out)

    ref = reference(x, w1, b1, w2, b2)
    assert out.shape == (B, S, D_MODEL)
    # bf16 MXU inputs/weights with f32 accumulation -> loose tolerance vs f32 ref.
    assert jnp.allclose(out, ref, atol=1e-2, rtol=1e-2), "mismatch vs reference"
    print("KERNEL_OK")
</pallas_src>

<mosaic_0001>
module attributes {stable_mosaic.version = 11 : i64} {
  func.func @ffn_kernel_f32out(%arg0: i32, %arg1: i32, %arg2: memref<16x128xbf16, #tpu.memory_space<vmem>>, %arg3: memref<128x128xbf16, #tpu.memory_space<vmem>>, %arg4: memref<1x128xf32, #tpu.memory_space<vmem>>, %arg5: memref<128x128xbf16, #tpu.memory_space<vmem>>, %arg6: memref<1x128xf32, #tpu.memory_space<vmem>>, %arg7: memref<16x128xf32, #tpu.memory_space<vmem>>) attributes {dimension_semantics = [#tpu.dimension_semantics<parallel>, #tpu.dimension_semantics<arbitrary>], iteration_bounds = array<i64: 1, 1>, scalar_prefetch = 0 : i64, scratch_operands = 0 : i64, tpu.core_type = #tpu.core_type<tc>, window_params = [{transform_indices = @transform_0, window_bounds = array<i64: 16, 128>}, {transform_indices = @transform_1, window_bounds = array<i64: 128, 128>}, {transform_indices = @transform_2, window_bounds = array<i64: 1, 128>}, {transform_indices = @transform_3, window_bounds = array<i64: 128, 128>}, {pipeline_mode = #tpu.pipeline_mode<synchronous>, transform_indices = @transform_4, window_bounds = array<i64: 1, 128>}, {transform_indices = @transform_5, window_bounds = array<i64: 16, 128>}]} {
    %c0_i32 = arith.constant 0 : i32
    %0 = arith.cmpi eq, %arg1, %c0_i32 : i32
    %1 = arith.extui %0 : i1 to i32
    %c0_i32_0 = arith.constant 0 : i32
    %2 = arith.cmpi ne, %1, %c0_i32_0 : i32
    scf.if %2 {
      %c0_14 = arith.constant 0 : index
      %c0_15 = arith.constant 0 : index
      %17 = vector.load %arg6[%c0_14, %c0_15] : memref<1x128xf32, #tpu.memory_space<vmem>>, vector<1x128xf32>
      %18 = vector.shape_cast %17 : vector<1x128xf32> to vector<1x128xf32>
      %19 = vector.broadcast %18 : vector<1x128xf32> to vector<16x128xf32>
      %c0_16 = arith.constant 0 : index
      %c0_17 = arith.constant 0 : index
      %20 = vector.load %arg7[%c0_16, %c0_17] : memref<16x128xf32, #tpu.memory_space<vmem>>, vector<16x128xf32>
      tpu.vector_store %arg7[%c0_16, %c0_17], %19 {strides = array<i32>} : memref<16x128xf32, #tpu.memory_space<vmem>>, vector<16x128xf32>,
    } else {
    }
    %c0 = arith.constant 0 : index
    %c0_1 = arith.constant 0 : index
    %3 = vector.load %arg2[%c0, %c0_1] : memref<16x128xbf16, #tpu.memory_space<vmem>>, vector<16x128xbf16>
    %c0_2 = arith.constant 0 : index
    %c0_3 = arith.constant 0 : index
    %4 = vector.load %arg3[%c0_2, %c0_3] : memref<128x128xbf16, #tpu.memory_space<vmem>>, vector<128x128xbf16>
    %cst = arith.constant dense<0.000000e+00> : vector<16x128xf32>
    %5 = tpu.matmul %3, %4, %cst {dimension_numbers = #tpu.dot_dimension_numbers<[1], [0], [0], [1], [0, 0, 1, 1], [], []>} : vector<16x128xbf16>, vector<128x128xbf16>, vector<16x128xf32> -> vector<16x128xf32>
    %c0_4 = arith.constant 0 : index
    %c0_5 = arith.constant 0 : index
    %6 = vector.load %arg4[%c0_4, %c0_5] : memref<1x128xf32, #tpu.memory_space<vmem>>, vector<1x128xf32>
    %7 = vector.broadcast %6 : vector<1x128xf32> to vector<16x128xf32>
    %8 = arith.addf %5, %7 : vector<16x128xf32>
    %cst_6 = arith.constant 0.000000e+00 : f32
    %9 = vector.broadcast %cst_6 : f32 to vector<16x128xf32>
    %10 = arith.maximumf %8, %9 : vector<16x128xf32>
    %c0_7 = arith.constant 0 : index
    %c0_8 = arith.constant 0 : index
    %11 = vector.load %arg7[%c0_7, %c0_8] : memref<16x128xf32, #tpu.memory_space<vmem>>, vector<16x128xf32>
    %12 = arith.truncf %10 : vector<16x128xf32> to vector<16x128xbf16>
    %c0_9 = arith.constant 0 : index
    %c0_10 = arith.constant 0 : index
    %13 = vector.load %arg5[%c0_9, %c0_10] : memref<128x128xbf16, #tpu.memory_space<vmem>>, vector<128x128xbf16>
    %cst_11 = arith.constant dense<0.000000e+00> : vector<16x128xf32>
    %14 = tpu.matmul %12, %13, %cst_11 {dimension_numbers = #tpu.dot_dimension_numbers<[1], [0], [0], [1], [0, 0, 1, 1], [], []>} : vector<16x128xbf16>, vector<128x128xbf16>, vector<16x128xf32> -> vector<16x128xf32>
    %15 = arith.addf %11, %14 : vector<16x128xf32>
    %c0_12 = arith.constant 0 : index
    %c0_13 = arith.constant 0 : index
    %16 = vector.load %arg7[%c0_12, %c0_13] : memref<16x128xf32, #tpu.memory_space<vmem>>, vector<16x128xf32>
    tpu.vector_store %arg7[%c0_12, %c0_13], %15 {strides = array<i32>} : memref<16x128xf32, #tpu.memory_space<vmem>>, vector<16x128xf32>,
    return
  }
  func.func @transform_0(%arg0: i32, %arg1: i32) -> (i32, i32) {
    %c0_i32 = arith.constant 0 : i32
    %c0_i32_0 = arith.constant 0 : i32
    return %arg0, %c0_i32 : i32, i32
  }
  func.func @transform_1(%arg0: i32, %arg1: i32) -> (i32, i32) {
    %c0_i32 = arith.constant 0 : i32
    %c0_i32_0 = arith.constant 0 : i32
    return %c0_i32, %arg1 : i32, i32
  }
  func.func @transform_2(%arg0: i32, %arg1: i32) -> (i32, i32) {
    %c0_i32 = arith.constant 0 : i32
    %c0_i32_0 = arith.constant 0 : i32
    return %c0_i32, %arg1 : i32, i32
  }
  func.func @transform_3(%arg0: i32, %arg1: i32) -> (i32, i32) {
    %c0_i32 = arith.constant 0 : i32
    %c0_i32_0 = arith.constant 0 : i32
    return %arg1, %c0_i32 : i32, i32
  }
  func.func @transform_4(%arg0: i32, %arg1: i32) -> (i32, i32) {
    %c0_i32 = arith.constant 0 : i32
    %c0_i32_0 = arith.constant 0 : i32
    %c0_i32_1 = arith.constant 0 : i32
    return %c0_i32, %c0_i32_0 : i32, i32
  }
  func.func @transform_5(%arg0: i32, %arg1: i32) -> (i32, i32) {
    %c0_i32 = arith.constant 0 : i32
    %c0_i32_0 = arith.constant 0 : i32
    return %arg0, %c0_i32 : i32, i32
  }
}

</mosaic_0001>

<bundles_post_ra>
// kernel: tpu_custom_call.1
= control target key start
LH: loop header
LB: loop body
LE: loop exit
PB: predicated region body
PF: predicated region fallthrough
CT: control target
= control target key end

     0   :  { %10 = vsyncpa [#allocation3], 0  ;;  %s528_s0 = inlined_call_operand.hbm [shape: bf16[16,128], index: 0, kind: input, shape index: {}]   ;;  %s529_s1 = inlined_call_operand.hbm [shape: bf16[128,128], index: 1, kind: input, shape index: {}]   ;;  %s530_s2 = inlined_call_operand.vmem [shape: f32[1,128], index: 2, kind: input, shape index: {}]   ;;  %s531_s3 = inlined_call_operand.hbm [shape: bf16[128,128], index: 3, kind: input, shape index: {}]   ;;  %s532_s4 = inlined_call_operand.vmem [shape: f32[1,128], index: 4, kind: input, shape index: {}]   ;;  %s533_s5 = inlined_call_operand.hbm [shape: f32[16,128], index: 5, kind: output, shape index: {}]  }
   0x1   :  { %11 = vsyncpa [#allocation6], 0 }
   0x2   :  { %12 = vsyncpa [#allocation4], 0  ;;  %s30_s20 = sshll.u32 %s529_s1, 4  ;;  %s472_s21 = smov [#allocation5]   ;;  %s31_s20 = int_to_ptr.hbm [resolvable:$true] %s30_s20 }
   0x3   :  { %s32_s22 = sshll.u32 %s472_s21, 4  ;;  %s17_s25 = sshll.u32 %s528_s0, 4  ;;  %s33_s22 = int_to_ptr.vmem [resolvable:$true] %s32_s22  ;;  %s18_s25 = int_to_ptr.hbm [resolvable:$true] %s17_s25 }
   0x4   :  { %s473_s26 = smov 64   ;;  %s474_s27 = smov 4  }
   0x5   :  { %38 = dma.hbm_to_vmem [thread:$0]  %s31_s20, 1024, %s33_s22, [#allocation6], %s473_s26, %s473_s26, %s474_s27  }
   0x6   :  { %s475_s28 = smov [#allocation2]   ;;  %s45_s7 = sshll.u32 %s531_s3, 4  ;;  %s46_s7 = int_to_ptr.hbm [resolvable:$true] %s45_s7 }
   0x7   :  { %s19_s29 = sshll.u32 %s475_s28, 4  ;;  %s476_s1 = smov [#allocation7]   ;;  %s20_s29 = int_to_ptr.vmem [resolvable:$true] %s19_s29 }
   0x8   :  { %25 = dma.hbm_to_vmem [thread:$0]  %s18_s25, 128, %s20_s29, [#allocation3], %s473_s26, %s473_s26, %s474_s27  }
   0x9   :  { %s47_s8 = sshll.u32 %s476_s1, 4  ;;  %s48_s8 = int_to_ptr.vmem [resolvable:$true] %s47_s8 }
   0xa   :  { %53 = dma.hbm_to_vmem [thread:$0]  %s46_s7, 1024, %s48_s8, [#allocation6], %s473_s26, %s473_s26, %s474_s27  }
   0xb   :  { %466 = dma.done.wait [#allocation3], 128  }
   0xc   :  { %467 = vsyncadd [#allocation3], 4294967168 }
   0xd   :  { %468 = dma.done.wait [#allocation6], 2048  }
   0xe   :  { %469 = vsyncadd [#allocation6], 4294965248  ;;  %v351_v0 = vld [vmem:[#allocation5 + $0x38] sm:$0xff]  ;;  %v350_v1 = vld [vmem:[#allocation5 + $0x30] sm:$0xff]  ;;  %s477_s11 = smov [#allocation8]   ;;  %s478_s15 = smov 128  }
   0xf   :  { %154 = vmatpush.bf16.msra.mxu0 %v351_v0  ;;  %v359_v2 = vld [vmem:[#allocation7 + $0x38] sm:$0xff]  ;;  %v358_v3 = vld [vmem:[#allocation7 + $0x30] sm:$0xff]  ;;  %v349_v4 = vld [vmem:[#allocation5 + $0x28] sm:$0xff]  ;;  %s259_s12 = sshll.u32 %s477_s11, 4  ;;  %s479_s16 = smov 8   ;;  %s260_s12 = int_to_ptr.vmem [resolvable:$true] %s259_s12 }
  0x10   :  { %237 = vmatpush.bf16.msra.mxu1 %v359_v2  ;;  %v357_v5 = vld [vmem:[#allocation7 + $0x28] sm:$0xff]  ;;  %v348_v6 = vld [vmem:[#allocation5 + $0x20] sm:$0xff]  ;;  %v347_v8 = vld [vmem:[#allocation5 + $0x18] sm:$0xff] }
  0x11   :  { %v356_v7 = vld [vmem:[#allocation7 + $0x20] sm:$0xff]  ;;  %v346_v9 = vld [vmem:[#allocation5 + $0x10] sm:$0xff]  ;;  %v345_v10 = vld [vmem:[#allocation5 + $0x8] sm:$0xff] }
  0x12   :  { %v344_v11 = vld [vmem:[#allocation5] sm:$0xff]  ;;  %v343_v12 = vld [vmem:[#allocation2] sm:$0xff]  ;;  %v354_v14 = vld [vmem:[#allocation7 + $0x10] sm:$0xff] }
  0x13   :  { %155 = vmatpush.bf16.msra.mxu0 %v350_v1  ;;  %v355_v13 = vld [vmem:[#allocation7 + $0x18] sm:$0xff]  ;;  %v353_v15 = vld [vmem:[#allocation7 + $0x8] sm:$0xff]  ;;  %v352_v16 = vld [vmem:[#allocation7] sm:$0xff] }
  0x14   :  { %238 = vmatpush.bf16.msra.mxu1 %v358_v3  ;;  %v368_v18 = vld [vmem:[%s530_s2] ss:$0 sm:$0xff]  ;;  %s261_s2 = sshll.u32 %s533_s5, 4  ;;  %s262_s2 = int_to_ptr.hbm [resolvable:$true] %s261_s2 }
  0x15   :  { %v369_v25 = vld [vmem:[%s532_s4] ss:$0 sm:$0xff] }
  0x17   :  { %156 = vmatpush.bf16.msra.mxu0 %v349_v4 }
  0x18   :  { %239 = vmatpush.bf16.msra.mxu1 %v357_v5 }
  0x1b   :  { %157 = vmatpush.bf16.msra.mxu0 %v348_v6 }
  0x1c   :  { %240 = vmatpush.bf16.msra.mxu1 %v356_v7 }
  0x1f   :  { %158 = vmatpush.bf16.msra.mxu0 %v347_v8 }
  0x20   :  { %241 = vmatpush.bf16.msra.mxu1 %v355_v13 }
  0x23   :  { %159 = vmatpush.bf16.msra.mxu0 %v346_v9 }
  0x24   :  { %242 = vmatpush.bf16.msra.mxu1 %v354_v14 }
  0x27   :  { %160 = vmatpush.bf16.msra.mxu0 %v345_v10 }
  0x28   :  { %243 = vmatpush.bf16.msra.mxu1 %v353_v15 }
  0x2b   :  { %161 = vmatpush.bf16.msra.mxu0 %v344_v11 }
  0x2c   :  { %244 = vmatpush.bf16.msra.mxu1 %v352_v16 }
  0x2e   :  { %162 = vmatmul.bf16.vlgmr.msra.gmra.mxu0 %v343_v12 }
  0xab   :  { %v163_v17 = vpop.f32.mrf.mxu0 }
  0xac   :  { %v164_v19 = vadd.f32 %v368_v18, %v163_v17 }
  0xae   :  { %v168_v22 = vmax.f32 %v164_v19, 0.0 }
  0xb3   :  { %v165_v20 = vpop.f32.mrf.mxu0 }
  0xb4   :  { %v166_v21 = vadd.f32 %v368_v18, %v165_v20 }
  0xb6   :  { %v169_v23 = vmax.f32 %v166_v21, 0.0 }
  0xb8   :  { %v172_v24 = vpack.c.bf16 %v169_v23, %v168_v22 }
  0xba   :  { %245 = vmatmul.bf16.vlgmr.msra.gmra.mxu1 %v172_v24 }
 0x137   :  { %v246_v26 = vpop.f32.mrf.mxu1 }
 0x138   :  { %v251_v27 = vadd.f32 %v369_v25, %v246_v26 }
 0x13a   :  { %253 = vst [vmem:[#allocation8] sm:$0xff] %v251_v27 }
 0x13f   :  { %v248_v28 = vpop.f32.mrf.mxu1 }
 0x140   :  { %v252_v29 = vadd.f32 %v369_v25, %v248_v28 }
 0x142   :  { %254 = vst [vmem:[#allocation8 + $0x8] sm:$0xff] %v252_v29 }
 0x143   :  { %267 = dma.vmem_to_hbm [thread:$0]  %s260_s12, 256, %s262_s2, [#allocation4], %s478_s15, %s478_s15, %s479_s16  }
 0x144   :  { %470 = dma.done.wait [#allocation4], 256  }
 0x145   :  { %471 = vsyncadd [#allocation4], 4294967040 }
 0x146   :  { %272 = vsyncpa [#allocation3], 1 }
 0x147   :  { %273 = vsyncpa [#allocation6], 1 }
 0x148   :  { %274 = vsyncpa [#allocation4], 1 }

</bundles_post_ra>
